<compile_context>
chip_gen: v6e
topology: v6e:2x2x1
jax: 0.10.0
libtpu: 0.0.40
codegen_flags: <defaults>
</compile_context>

<pallas_src>
import functools

import jax
import jax.numpy as jnp
from jax.experimental import pallas as pl
from jax.experimental.pallas import tpu as pltpu

EPS = 1e-5
DROPOUT_P = 0.1
_VMEM_LIMIT = 32 * 1024 * 1024  # safe on v5e (16 MiB scoped default) .. v7x (64 MiB phys)


def _hash_u32(x):
    """murmur3 fmix32 finalizer: well-mixed 32-bit hash, pure VPU integer ops."""
    x = x ^ (x >> 16)
    x = x * jnp.uint32(0x85EBCA6B)
    x = x ^ (x >> 13)
    x = x * jnp.uint32(0xC2B2AE35)
    x = x ^ (x >> 16)
    return x


def _linear_relu(x_ref, w_ref, b_ref):
    # x: (TN, Fin), w: (Fout, Fin)  ->  relu(x @ w.T + b): (TN, Fout).
    # dot_general in A.B^T form consumes the PyTorch-layout (Fout, Fin) weight directly,
    # avoiding a per-call transpose (an extra HBM read+write) in the wrapper.
    h = jax.lax.dot_general(
        x_ref[...], w_ref[...],
        dimension_numbers=(((1,), (1,)), ((), ())),
        preferred_element_type=jnp.float32)
    return jnp.maximum(h + b_ref[...], 0.0)


def _stats_kernel(x_ref, w_ref, b_ref, stats_ref, *, n_rows, block_rows):
    i = pl.program_id(0)

    @pl.when(i == 0)
    def _():
        stats_ref[...] = jnp.zeros_like(stats_ref)

    h = _linear_relu(x_ref, w_ref, b_ref)                        # (TN, Fout)

    # Mask rows that belong to the zero-padding of the batch axis.
    row_ids = i * block_rows + jax.lax.broadcasted_iota(jnp.int32, (block_rows, 1), 0)
    h = jnp.where(row_ids < n_rows, h, 0.0)

    s = jnp.sum(h, axis=0, keepdims=True)                        # (1, Fout)
    ss = jnp.sum(h * h, axis=0, keepdims=True)                   # (1, Fout)
    stats_ref[...] += jnp.concatenate([s, ss], axis=0)           # (2, Fout)


def _apply_kernel(seed_ref, x_ref, w_ref, b_ref, gamma_ref, beta_ref, stats_ref,
                  o_ref, *, n_rows, block_rows, drop_p):
    i = pl.program_id(0)

    h = _linear_relu(x_ref, w_ref, b_ref)                        # (TN, Fout)

    # Batch statistics (biased variance = PyTorch BatchNorm1d training semantics).
    inv_n = 1.0 / n_rows
    stats = stats_ref[...]
    mean = stats[0:1, :] * inv_n                                 # (1, Fout)
    var = jnp.maximum(stats[1:2, :] * inv_n - mean * mean, 0.0)  # (1, Fout)
    inv_std = jax.lax.rsqrt(var + EPS)

    # Fold BN affine + dropout 1/(1-p) rescale into one per-feature scale/shift row,
    # so the full (TN, Fout) element chain is just fma + select.
    keep_scale = 1.0 / (1.0 - drop_p) if drop_p > 0.0 else 1.0
    scale = gamma_ref[...] * inv_std * keep_scale                # (1, Fout)
    shift = (beta_ref[...] - gamma_ref[...] * mean * inv_std) * keep_scale
    y = h * scale + shift                                        # (TN, Fout)

    if drop_p > 0.0:
        # Stateless hash PRNG keyed on (seed, global element index): deterministic and
        # tiling-independent -> every batch tile gets a distinct dropout mask.
        n_cols = y.shape[1]
        rows = i * block_rows + jax.lax.broadcasted_iota(jnp.int32, y.shape, 0)
        cols = jax.lax.broadcasted_iota(jnp.int32, y.shape, 1)
        ctr = (rows * n_cols + cols).astype(jnp.uint32)
        seed_u = seed_ref[0].astype(jnp.uint32)
        bits = _hash_u32(ctr + seed_u * jnp.uint32(0x9E3779B9))
        threshold = jnp.uint32(int(drop_p * 4294967296.0))       # drop iff bits < p * 2^32
        y = jnp.where(bits >= threshold, y, 0.0)

    o_ref[...] = y.astype(o_ref.dtype)


def mlp_block(x, w, b, gamma, beta, seed, *, dropout_p=DROPOUT_P, block_rows=512):
    """Training-mode MLPBlock forward.

    x: (N, Fin) f32; w: (Fout, Fin); b, gamma, beta: (Fout,); seed: python int.
    """
    n, fin = x.shape
    fout = w.shape[0]

    # Tile the batch axis. 512-1024 rows is near the HBM roofline for large N; clamp to
    # an 8-aligned batch for small inputs so we don't pad excessively.
    block_rows = min(block_rows, pl.cdiv(n, 8) * 8)
    block_rows = max(8, (block_rows // 8) * 8)
    n_pad = pl.cdiv(n, block_rows) * block_rows
    if n_pad != n:
        x = jnp.pad(x, ((0, n_pad - n), (0, 0)))
    num_tiles = n_pad // block_rows

    b2 = jnp.asarray(b, jnp.float32).reshape(1, fout)
    g2 = jnp.asarray(gamma, jnp.float32).reshape(1, fout)
    be2 = jnp.asarray(beta, jnp.float32).reshape(1, fout)
    seed_arr = jnp.asarray([seed], jnp.int32)

    # ---- Pass 1: per-feature sum / sum-of-squares over the full batch -----------------
    stats = pl.pallas_call(
        functools.partial(_stats_kernel, n_rows=n, block_rows=block_rows),
        out_shape=jax.ShapeDtypeStruct((2, fout), jnp.float32),
        grid=(num_tiles,),
        in_specs=[
            pl.BlockSpec((block_rows, fin), lambda i: (i, 0)),   # x tiles stream
            pl.BlockSpec((fout, fin), lambda i: (0, 0)),         # weight resident
            pl.BlockSpec((1, fout), lambda i: (0, 0)),           # bias resident
        ],
        out_specs=pl.BlockSpec((2, fout), lambda i: (0, 0)),     # VMEM-resident accumulator
        compiler_params=pltpu.CompilerParams(
            dimension_semantics=("arbitrary",),                  # batch axis is a reduction
            vmem_limit_bytes=_VMEM_LIMIT),
    )(x, w, b2)

    # ---- Pass 2: normalize + affine + dropout, parallel over batch tiles ---------------
    def _tile(i, seed_ref):   # index_maps receive the scalar-prefetch ref positionally
        return (i, 0)

    def _const(i, seed_ref):
        return (0, 0)

    out = pl.pallas_call(
        functools.partial(_apply_kernel, n_rows=n, block_rows=block_rows,
                          drop_p=float(dropout_p)),
        out_shape=jax.ShapeDtypeStruct((n_pad, fout), x.dtype),
        grid_spec=pltpu.PrefetchScalarGridSpec(
            num_scalar_prefetch=1,                               # seed -> SMEM
            grid=(num_tiles,),
            in_specs=[
                pl.BlockSpec((block_rows, fin), _tile),          # x tiles stream
                pl.BlockSpec((fout, fin), _const),               # weight resident
                pl.BlockSpec((1, fout), _const),                 # bias
                pl.BlockSpec((1, fout), _const),                 # gamma
                pl.BlockSpec((1, fout), _const),                 # beta
                pl.BlockSpec((2, fout), _const),                 # batch stats
            ],
            out_specs=pl.BlockSpec((block_rows, fout), _tile),   # lane-dense output
        ),
        compiler_params=pltpu.CompilerParams(
            dimension_semantics=("parallel",),                   # megacore-shardable (v7x)
            vmem_limit_bytes=_VMEM_LIMIT),
    )(seed_arr, x, w, b2, g2, be2, stats)

    return out[:n]


if __name__ == "__main__":
    # Small-but-tiled demo: batch=256, in_features=32, out_features=128, 2 batch tiles.
    N, FIN, FOUT = 256, 32, 128

    key = jax.random.PRNGKey(0)
    kx, kw, kb = jax.random.split(key, 3)

    x = jax.random.normal(kx, (N, FIN), dtype=jnp.float32)
    # nn.Linear default init: U(-1/sqrt(Fin), 1/sqrt(Fin)) for weight and bias.
    bound = 1.0 / (FIN ** 0.5)
    w = jax.random.uniform(kw, (FOUT, FIN), jnp.float32, -bound, bound)
    b = jax.random.uniform(kb, (FOUT,), jnp.float32, -bound, bound)
    # BatchNorm1d default affine params.
    gamma = jnp.ones((FOUT,), jnp.float32)
    beta = jnp.zeros((FOUT,), jnp.float32)

    out = mlp_block(x, w, b, gamma, beta, seed=1234, block_rows=128)  # grid = (2,)
    out = jax.block_until_ready(out)
    assert out.shape == (N, FOUT)

    # Reference for the deterministic part. Dropout only rescales kept elements by
    # 1/(1-p), so every nonzero output must equal ref / (1 - p).
    h_ref = jnp.maximum(x @ w.T + b, 0.0)
    mean_ref = h_ref.mean(axis=0, keepdims=True)
    var_ref = ((h_ref - mean_ref) ** 2).mean(axis=0, keepdims=True)
    y_ref = gamma * (h_ref - mean_ref) * jax.lax.rsqrt(var_ref + EPS) + beta
    scaled_ref = y_ref / (1.0 - DROPOUT_P)

    kept = out != 0.0
    max_err = float(jnp.abs(jnp.where(kept, out - scaled_ref, 0.0)).max())
    assert max_err < 1e-3, f"mismatch on kept elements: {max_err}"
    drop_frac = 1.0 - float(jnp.mean(kept.astype(jnp.float32)))
    assert 0.02 < drop_frac < 0.25, f"implausible dropout rate: {drop_frac}"

    print("KERNEL_OK")
</pallas_src>

<mosaic_0001>
module attributes {stable_mosaic.version = 11 : i64} {
  func.func @_stats_kernel(%arg0: i32, %arg1: memref<128x32xf32, #tpu.memory_space<vmem>>, %arg2: memref<128x32xf32, #tpu.memory_space<vmem>>, %arg3: memref<1x128xf32, #tpu.memory_space<vmem>>, %arg4: memref<2x128xf32, #tpu.memory_space<vmem>>) attributes {dimension_semantics = [#tpu.dimension_semantics<arbitrary>], iteration_bounds = array<i64: 2>, scalar_prefetch = 0 : i64, scratch_operands = 0 : i64, tpu.core_type = #tpu.core_type<tc>, window_params = [{transform_indices = @transform_0, window_bounds = array<i64: 128, 32>}, {pipeline_mode = #tpu.pipeline_mode<synchronous>, transform_indices = @transform_1, window_bounds = array<i64: 128, 32>}, {pipeline_mode = #tpu.pipeline_mode<synchronous>, transform_indices = @transform_2, window_bounds = array<i64: 1, 128>}, {pipeline_mode = #tpu.pipeline_mode<synchronous>, transform_indices = @transform_3, window_bounds = array<i64: 2, 128>}]} {
    %c0_i32 = arith.constant 0 : i32
    %0 = arith.cmpi eq, %arg0, %c0_i32 : i32
    %1 = arith.extui %0 : i1 to i32
    %c0_i32_0 = arith.constant 0 : i32
    %2 = arith.cmpi ne, %1, %c0_i32_0 : i32
    scf.if %2 {
      %cst_14 = arith.constant 0.000000e+00 : f32
      %30 = vector.broadcast %cst_14 : f32 to vector<2x128xf32>
      %c0_15 = arith.constant 0 : index
      %c0_16 = arith.constant 0 : index
      %31 = vector.load %arg4[%c0_15, %c0_16] : memref<2x128xf32, #tpu.memory_space<vmem>>, vector<2x128xf32>
      tpu.vector_store %arg4[%c0_15, %c0_16], %30 {strides = array<i32>} : memref<2x128xf32, #tpu.memory_space<vmem>>, vector<2x128xf32>,
    } else {
    }
    %c0 = arith.constant 0 : index
    %c0_1 = arith.constant 0 : index
    %3 = vector.load %arg1[%c0, %c0_1] : memref<128x32xf32, #tpu.memory_space<vmem>>, vector<128x32xf32>
    %c0_2 = arith.constant 0 : index
    %c0_3 = arith.constant 0 : index
    %4 = vector.load %arg2[%c0_2, %c0_3] : memref<128x32xf32, #tpu.memory_space<vmem>>, vector<128x32xf32>
    %cst = arith.constant dense<0.000000e+00> : vector<128x128xf32>
    %5 = tpu.matmul %3, %4, %cst {dimension_numbers = #tpu.dot_dimension_numbers<[1], [1], [0], [0], [0, 0, 1, 0], [], []>} : vector<128x32xf32>, vector<128x32xf32>, vector<128x128xf32> -> vector<128x128xf32>
    %c0_4 = arith.constant 0 : index
    %c0_5 = arith.constant 0 : index
    %6 = vector.load %arg3[%c0_4, %c0_5] : memref<1x128xf32, #tpu.memory_space<vmem>>, vector<1x128xf32>
    %7 = vector.broadcast %6 : vector<1x128xf32> to vector<128x128xf32>
    %8 = arith.addf %5, %7 : vector<128x128xf32>
    %cst_6 = arith.constant 0.000000e+00 : f32
    %9 = vector.broadcast %cst_6 : f32 to vector<128x128xf32>
    %10 = arith.maximumf %8, %9 : vector<128x128xf32>
    %c128_i32 = arith.constant 128 : i32
    %11 = arith.muli %arg0, %c128_i32 : i32
    %12 = tpu.iota {dimensions = array<i32: 0>} : vector<128x1xi32>
    %13 = vector.broadcast %11 : i32 to vector<128x1xi32>
    %14 = arith.addi %13, %12 : vector<128x1xi32>
    %c256_i32 = arith.constant 256 : i32
    %15 = vector.broadcast %c256_i32 : i32 to vector<128x1xi32>
    %16 = arith.cmpi slt, %14, %15 : vector<128x1xi32>
    %cst_7 = arith.constant 0.000000e+00 : f32
    %17 = vector.shape_cast %16 : vector<128x1xi1> to vector<128x1xi1>
    %18 = vector.broadcast %17 : vector<128x1xi1> to vector<128x128xi1>
    %19 = vector.broadcast %cst_7 : f32 to vector<128x128xf32>
    %20 = arith.select %18, %10, %19 : vector<128x128xi1>, vector<128x128xf32>
    %cst_8 = arith.constant dense<0.000000e+00> : vector<128xf32>
    %21 = vector.multi_reduction <add>, %20, %cst_8 [0] : vector<128x128xf32> to vector<128xf32>
    %22 = vector.shape_cast %21 : vector<128xf32> to vector<1x128xf32>
    %23 = arith.mulf %20, %20 : vector<128x128xf32>
    %cst_9 = arith.constant dense<0.000000e+00> : vector<128xf32>
    %24 = vector.multi_reduction <add>, %23, %cst_9 [0] : vector<128x128xf32> to vector<128xf32>
    %25 = vector.shape_cast %24 : vector<128xf32> to vector<1x128xf32>
    %c0_10 = arith.constant 0 : index
    %c0_11 = arith.constant 0 : index
    %26 = vector.load %arg4[%c0_10, %c0_11] : memref<2x128xf32, #tpu.memory_space<vmem>>, vector<2x128xf32>
    %27 = tpu.concatenate %22, %25 in 0 : vector<1x128xf32>, vector<1x128xf32> -> vector<2x128xf32>
    %28 = arith.addf %26, %27 : vector<2x128xf32>
    %c0_12 = arith.constant 0 : index
    %c0_13 = arith.constant 0 : index
    %29 = vector.load %arg4[%c0_12, %c0_13] : memref<2x128xf32, #tpu.memory_space<vmem>>, vector<2x128xf32>
    tpu.vector_store %arg4[%c0_12, %c0_13], %28 {strides = array<i32>} : memref<2x128xf32, #tpu.memory_space<vmem>>, vector<2x128xf32>,
    return
  }
  func.func @transform_0(%arg0: i32) -> (i32, i32) {
    %c0_i32 = arith.constant 0 : i32
    %c0_i32_0 = arith.constant 0 : i32
    return %arg0, %c0_i32 : i32, i32
  }
  func.func @transform_1(%arg0: i32) -> (i32, i32) {
    %c0_i32 = arith.constant 0 : i32
    %c0_i32_0 = arith.constant 0 : i32
    %c0_i32_1 = arith.constant 0 : i32
    return %c0_i32, %c0_i32_0 : i32, i32
  }
  func.func @transform_2(%arg0: i32) -> (i32, i32) {
    %c0_i32 = arith.constant 0 : i32
    %c0_i32_0 = arith.constant 0 : i32
    %c0_i32_1 = arith.constant 0 : i32
    return %c0_i32, %c0_i32_0 : i32, i32
  }
  func.func @transform_3(%arg0: i32) -> (i32, i32) {
    %c0_i32 = arith.constant 0 : i32
    %c0_i32_0 = arith.constant 0 : i32
    %c0_i32_1 = arith.constant 0 : i32
    return %c0_i32, %c0_i32_0 : i32, i32
  }
}

</mosaic_0001>

<bundles_post_ra>
// kernel: tpu_custom_call.1
= control target key start
LH: loop header
LB: loop body
LE: loop exit
PB: predicated region body
PF: predicated region fallthrough
CT: control target
= control target key end

     0   :  { %8 = vsyncpa [#allocation3], 0  ;;  %s908_s12 = smov 0   ;;  %s1172_s0 = inlined_call_operand.vmem [shape: f32[256,32], index: 0, kind: input, shape index: {}]   ;;  %s1173_s1 = inlined_call_operand.vmem [shape: f32[128,32], index: 1, kind: input, shape index: {}]   ;;  %s1174_s2 = inlined_call_operand.vmem [shape: f32[1,128], index: 2, kind: input, shape index: {}]   ;;  %s1175_s3 = inlined_call_operand.hbm [shape: f32[2,128], index: 3, kind: output, shape index: {}]  }
   0x1 LB: > { %s914_s13 = sadd.s32 4294967295, %s884_s12   ;;  %p672_p0 = scmp.ge.s32.totalorder %s884_s12, 1  ;;  %s884_s12 = sphi %s908_s12, %s14_s12  }
   0x2   : > { %p134_p1 = scmp.lt.s32.totalorder %s884_s12, 3 }
   0x4   : > { %p135_p2 = pnand %p672_p0, %p134_p1 }
   0x5   : > { %s673_s14 = sshll.u32 (!%p135_p2), %s914_s13, 4  ;;  %p675_p4 = scmp.ne.s32.totalorder (!%p135_p2), %s914_s13, 0 }
   0x6   : > { %138 = sbr.rel (%p135_p2) target bundleno = 337 (0x151), region = 32  ;;  %p154_p3 = scmp.lt.s32.totalorder (!%p135_p2), %s673_s14, 31 }
   0xb   : > { %s1177_s14 = smov (!%p154_p3, %s673_s14), 31  ;;  %162 = sbr.rel (%p675_p4) target bundleno = 18 (0x12), region = 36 }
   0xc   : > { %s674_s15 = sshll.u32 %s1177_s14, 3 }
   0xd   : > { %s922_s18 = scalar_lea.vmem %s1172_s0, %s674_s15 }
  0x10   : > { %v886_v0 = vmov 0.0  }
  0x11   : > { %163 = vst [vmem:[#allocation2] sm:$0x3] %v886_v0 }
  0x12 PF: > { %v195_v1 = vld [vmem:[%s1173_s1 + $0x78] sm:$0xff]  ;;  %vm203_vm0 = vcmask 261120   ;;  %v194_v2 = vld [vmem:[%s1173_s1 + $0x70] sm:$0xff]  ;;  %v193_v3 = vld [vmem:[%s1173_s1 + $0x68] sm:$0xff]  ;;  %v462_v33 = vlaneseq  ;;  %s709_s27 = sshll.u32 %s914_s13, 7  ;;  %p838_p5 = scmp.eq.s32.totalorder %s914_s13, 1 }
  0x13   : > { %746 = vmatprep.subr.msk.mxu0 %vm203_vm0, %v195_v1  ;;  %802 = vmatprep.subr.msk.mxu1 %vm203_vm0, %v195_v1  ;;  %v164_v4 = vld [vmem:[%s922_s18] sm:$0xff]  ;;  %v191_v7 = vld [vmem:[%s1173_s1 + $0x58] sm:$0xff]  ;;  %v190_v8 = vld [vmem:[%s1173_s1 + $0x50] sm:$0xff]  ;;  %v1073_v36 = vstv %s709_s27 }
  0x14   : > { %747 = vmatpush3.xpose.msk.msra.mxu0 %vm203_vm0, %v195_v1  ;;  %818 = vmatpush3.xpose.msk.msra.mxu1 %vm203_vm0, %v195_v1  ;;  %v192_v5 = vld [vmem:[%s1173_s1 + $0x60] sm:$0xff]  ;;  %v189_v9 = vld [vmem:[%s1173_s1 + $0x48] sm:$0xff]  ;;  %v187_v11 = vld [vmem:[%s1173_s1 + $0x38] sm:$0xff]  ;;  %v1069_v34 = vshrl.u32 %v462_v33, 7 }
  0x15   : > { %748 = vmatprep.subr.msk.mxu0 %vm203_vm0, %v194_v2  ;;  %803 = vmatprep.subr.msk.mxu1 %vm203_vm0, %v194_v2  ;;  %v172_v6 = vld [vmem:[%s922_s18 + $0x40] sm:$0xff]  ;;  %v186_v12 = vld [vmem:[%s1173_s1 + $0x30] sm:$0xff]  ;;  %v185_v13 = vld [vmem:[%s1173_s1 + $0x28] sm:$0xff] }
  0x16   : > { %778 = vmatprep.mubr.msk.f32.mxu0 %vm203_vm0, %v164_v4  ;;  %790 = vmatprep.mubr.msk.f32.mxu1 %vm203_vm0, %v172_v6  ;;  %v188_v10 = vld [vmem:[%s1173_s1 + $0x40] sm:$0xff]  ;;  %v183_v15 = vld [vmem:[%s1173_s1 + $0x18] sm:$0xff]  ;;  %v182_v16 = vld [vmem:[%s1173_s1 + $0x10] sm:$0xff]  ;;  %v464_v35 = vadd.s32 8, %v1069_v34  ;;  %v466_v37 = vadd.s32 24, %v1069_v34  ;;  %v465_v39 = vadd.s32 16, %v1069_v34  ;;  %v480_v43 = vadd.s32 %v1073_v36, %v1069_v34 }
  0x17   : > { %v184_v14 = vld [vmem:[%s1173_s1 + $0x20] sm:$0xff]  ;;  %v181_v17 = vld [vmem:[%s1173_s1 + $0x8] sm:$0xff]  ;;  %v166_v21 = vld [vmem:[%s922_s18 + $0x10] sm:$0xff]  ;;  %v468_v40 = vadd.s32 40, %v1069_v34  ;;  %v467_v44 = vadd.s32 32, %v1069_v34  ;;  %v470_v48 = vadd.s32 56, %v1069_v34 }
  0x18   : > { %749 = vmatpush3.xpose.msk.msra.mxu0 %vm203_vm0, %v194_v2  ;;  %819 = vmatpush3.xpose.msk.msra.mxu1 %vm203_vm0, %v194_v2  ;;  %v180_v18 = vld [vmem:[%s1173_s1] sm:$0xff]  ;;  %v165_v19 = vld [vmem:[%s922_s18 + $0x8] sm:$0xff]  ;;  %v174_v22 = vld [vmem:[%s922_s18 + $0x50] sm:$0xff]  ;;  %v481_v42 = vadd.s32 %v1073_v36, %v464_v35  ;;  %v483_v47 = vadd.s32 %v1073_v36, %v466_v37  ;;  %v482_v50 = vadd.s32 %v1073_v36, %v465_v39  ;;  %v469_v52 = vadd.s32 48, %v1069_v34 }
  0x19   : > { %750 = vmatprep.subr.msk.mxu0 %vm203_vm0, %v193_v3  ;;  %804 = vmatprep.subr.msk.mxu1 %vm203_vm0, %v193_v3  ;;  %v173_v20 = vld [vmem:[%s922_s18 + $0x48] sm:$0xff]  ;;  %v167_v23 = vld [vmem:[%s922_s18 + $0x18] sm:$0xff]  ;;  %v168_v25 = vld [vmem:[%s922_s18 + $0x20] sm:$0xff]  ;;  %v485_v51 = vadd.s32 %v1073_v36, %v468_v40  ;;  %v471_v54 = vadd.s32 64, %v1069_v34  ;;  %vm496_vm2 = vcmp.lt.s32.totalorder %v480_v43, 256  ;;  %v484_v58 = vadd.s32 %v1073_v36, %v467_v44 }
  0x1a   : > { %v175_v24 = vld [vmem:[%s922_s18 + $0x58] sm:$0xff]  ;;  %v176_v26 = vld [vmem:[%s922_s18 + $0x60] sm:$0xff]  ;;  %v169_v27 = vld [vmem:[%s922_s18 + $0x28] sm:$0xff]  ;;  %vm497_vm1 = vcmp.lt.s32.totalorder %v481_v42, 256  ;;  %v472_v59 = vadd.s32 72, %v1069_v34  ;;  %vm499_vm3 = vcmp.lt.s32.totalorder %v483_v47, 256  ;;  %v1103_v63 = vadd.s32 %v1073_v36, %v470_v48 }
  0x1b   : > { %v177_v28 = vld [vmem:[%s922_s18 + $0x68] sm:$0xff]  ;;  %v170_v29 = vld [vmem:[%s922_s18 + $0x30] sm:$0xff]  ;;  %v171_v31 = vld [vmem:[%s922_s18 + $0x38] sm:$0xff]  ;;  %vm498_vm4 = vcmp.lt.s32.totalorder %v482_v50, 256  ;;  %vm501_vm5 = vcmp.lt.s32.totalorder %v485_v51, 256  ;;  %v486_v1 = vadd.s32 %v1073_v36, %v469_v52  ;;  %v1107_v2 = vadd.s32 %v1073_v36, %v471_v54 }
  0x1c   : > { %751 = vmatpush3.xpose.msk.msra.mxu0 %vm203_vm0, %v193_v3  ;;  %820 = vmatpush3.xpose.msk.msra.mxu1 %vm203_vm0, %v193_v3  ;;  %v178_v30 = vld [vmem:[%s922_s18 + $0x70] sm:$0xff]  ;;  %v179_v32 = vld [vmem:[%s922_s18 + $0x78] sm:$0xff]  ;;  %v1079_v38 = vld [vmem:[%s1174_s2] ss:$0 sm:$0xff]  ;;  %vm500_vm6 = vcmp.lt.s32.totalorder %v484_v58, 256  ;;  %vm503_vm7 = vcmp.lt.s32.totalorder %v1103_v63, 256 }
  0x1d   : > { %752 = vmatprep.subr.msk.mxu0 %vm203_vm0, %v192_v5  ;;  %805 = vmatprep.subr.msk.mxu1 %vm203_vm0, %v192_v5  ;;  %vm502_vm8 = vcmp.lt.s32.totalorder %v486_v1, 256  ;;  %vm504_vm9 = vcmp.lt.s32.totalorder %v1107_v2, 256  ;;  %v476_v51 = vadd.s32 104, %v1069_v34  ;;  %s887_s18 = smov [#allocation2]  }
  0x1e   : > { %s630_s30 = sshll.u32 %s887_s18, 4  ;;  %s631_s30 = int_to_ptr.vmem [resolvable:$true] %s630_s30 }
  0x1f   : > { %v493_v2 = vadd.s32 %v1073_v36, %v476_v51  ;;  %s850_s4 = scalar_lea.vmem %s631_s30, 32  ;;  %p857_p9 = scmp.lt.s32.totalorder %s631_s30, %s631_s30 }
  0x20   : > { %753 = vmatpush3.xpose.msk.msra.mxu0 %vm203_vm0, %v192_v5  ;;  %821 = vmatpush3.xpose.msk.msra.mxu1 %vm203_vm0, %v192_v5  ;;  %p851_p6 = scmp.ne.s32.totalorder %s631_s30, %s850_s4  ;;  %p858_p10 = scmp.lt.s32.totalorder %s850_s4, %s850_s4 }
  0x21   : > { %754 = vmatprep.subr.msk.mxu0 %vm203_vm0, %v191_v7  ;;  %806 = vmatprep.subr.msk.mxu1 %vm203_vm0, %v191_v7  ;;  %vm509_vm14 = vcmp.lt.s32.totalorder %v493_v2, 256 }
  0x22   : > { %p852_p7 = pnand %p851_p6, %p838_p5  ;;  %p859_p11 = por %p858_p10, %p857_p9 }
  0x24   : > { %755 = vmatpush3.xpose.msk.msra.mxu0 %vm203_vm0, %v191_v7  ;;  %822 = vmatpush3.xpose.msk.msra.mxu1 %vm203_vm0, %v191_v7  ;;  %p853_p8 = pneg %p852_p7 }
  0x25   : > { %756 = vmatprep.subr.msk.mxu0 %vm203_vm0, %v190_v8  ;;  %807 = vmatprep.subr.msk.mxu1 %vm203_vm0, %v190_v8 }
  0x26   : > { %p860_p12 = pnand %p859_p11, %p853_p8 }
  0x28   : > { %757 = vmatpush3.xpose.msk.msra.mxu0 %vm203_vm0, %v190_v8  ;;  %823 = vmatpush3.xpose.msk.msra.mxu1 %vm203_vm0, %v190_v8 }
  0x29   : > { %758 = vmatprep.subr.msk.mxu0 %vm203_vm0, %v189_v9  ;;  %808 = vmatprep.subr.msk.mxu1 %vm203_vm0, %v189_v9 }
  0x2c   : > { %759 = vmatpush3.xpose.msk.msra.mxu0 %vm203_vm0, %v189_v9  ;;  %824 = vmatpush3.xpose.msk.msra.mxu1 %vm203_vm0, %v189_v9 }
  0x2d   : > { %760 = vmatprep.subr.msk.mxu0 %vm203_vm0, %v188_v10  ;;  %809 = vmatprep.subr.msk.mxu1 %vm203_vm0, %v188_v10 }
  0x30   : > { %761 = vmatpush3.xpose.msk.msra.mxu0 %vm203_vm0, %v188_v10  ;;  %825 = vmatpush3.xpose.msk.msra.mxu1 %vm203_vm0, %v188_v10  ;;  %v1113_v10 = vadd.s32 %v1073_v36, %v472_v59 }
  0x31   : > { %762 = vmatprep.subr.msk.mxu0 %vm203_vm0, %v187_v11  ;;  %810 = vmatprep.subr.msk.mxu1 %vm203_vm0, %v187_v11 }
  0x32   : > { %vm505_vm10 = vcmp.lt.s32.totalorder %v1113_v10, 256 }
  0x34   : > { %763 = vmatpush3.xpose.msk.msra.mxu0 %vm203_vm0, %v187_v11  ;;  %826 = vmatpush3.xpose.msk.msra.mxu1 %vm203_vm0, %v187_v11  ;;  %v474_v11 = vadd.s32 88, %v1069_v34 }
  0x35   : > { %764 = vmatprep.subr.msk.mxu0 %vm203_vm0, %v186_v12  ;;  %811 = vmatprep.subr.msk.mxu1 %vm203_vm0, %v186_v12 }
  0x38   : > { %765 = vmatpush3.xpose.msk.msra.mxu0 %vm203_vm0, %v186_v12  ;;  %827 = vmatpush3.xpose.msk.msra.mxu1 %vm203_vm0, %v186_v12 }
  0x39   : > { %766 = vmatprep.subr.msk.mxu0 %vm203_vm0, %v185_v13  ;;  %812 = vmatprep.subr.msk.mxu1 %vm203_vm0, %v185_v13 }
  0x3c   : > { %767 = vmatpush3.xpose.msk.msra.mxu0 %vm203_vm0, %v185_v13  ;;  %828 = vmatpush3.xpose.msk.msra.mxu1 %vm203_vm0, %v185_v13 }
  0x3d   : > { %768 = vmatprep.subr.msk.mxu0 %vm203_vm0, %v184_v14  ;;  %813 = vmatprep.subr.msk.mxu1 %vm203_vm0, %v184_v14 }
  0x40   : > { %769 = vmatpush3.xpose.msk.msra.mxu0 %vm203_vm0, %v184_v14  ;;  %829 = vmatpush3.xpose.msk.msra.mxu1 %vm203_vm0, %v184_v14  ;;  %v473_v14 = vadd.s32 80, %v1069_v34 }
  0x41   : > { %770 = vmatprep.subr.msk.mxu0 %vm203_vm0, %v183_v15  ;;  %814 = vmatprep.subr.msk.mxu1 %vm203_vm0, %v183_v15 }
  0x44   : > { %771 = vmatpush3.xpose.msk.msra.mxu0 %vm203_vm0, %v183_v15  ;;  %830 = vmatpush3.xpose.msk.msra.mxu1 %vm203_vm0, %v183_v15 }
  0x45   : > { %772 = vmatprep.subr.msk.mxu0 %vm203_vm0, %v182_v16  ;;  %815 = vmatprep.subr.msk.mxu1 %vm203_vm0, %v182_v16 }
  0x48   : > { %773 = vmatpush3.xpose.msk.msra.mxu0 %vm203_vm0, %v182_v16  ;;  %831 = vmatpush3.xpose.msk.msra.mxu1 %vm203_vm0, %v182_v16 }
  0x49   : > { %774 = vmatprep.subr.msk.mxu0 %vm203_vm0, %v181_v17  ;;  %816 = vmatprep.subr.msk.mxu1 %vm203_vm0, %v181_v17 }
  0x4c   : > { %775 = vmatpush3.xpose.msk.msra.mxu0 %vm203_vm0, %v181_v17  ;;  %832 = vmatpush3.xpose.msk.msra.mxu1 %vm203_vm0, %v181_v17 }
  0x4d   : > { %776 = vmatprep.subr.msk.mxu0 %vm203_vm0, %v180_v18  ;;  %817 = vmatprep.subr.msk.mxu1 %vm203_vm0, %v180_v18 }
  0x50   : > { %777 = vmatpush3.xpose.msk.msra.mxu0 %vm203_vm0, %v180_v18  ;;  %833 = vmatpush3.xpose.msk.msra.mxu1 %vm203_vm0, %v180_v18 }
  0x53   : > { %779 = vmatmul.mubr.msk.f32.vlgmr.msra.gmra.mxu0 %vm203_vm0, %v165_v19  ;;  %791 = vmatmul.mubr.msk.f32.vlgmr.msra.gmra.mxu1 %vm203_vm0, %v173_v20 }
  0x54   : > { %781 = vmatprep.mubr.msk.f32.mxu0 %vm203_vm0, %v166_v21  ;;  %793 = vmatprep.mubr.msk.f32.mxu1 %vm203_vm0, %v174_v22 }
  0x57   : > { %782 = vmatmul.mubr.msk.f32.gmra.mxu0 %vm203_vm0, %v167_v23  ;;  %794 = vmatmul.mubr.msk.f32.gmra.mxu1 %vm203_vm0, %v175_v24 }
  0x58   : > { %784 = vmatprep.mubr.msk.f32.mxu0 %vm203_vm0, %v168_v25  ;;  %796 = vmatprep.mubr.msk.f32.mxu1 %vm203_vm0, %v176_v26 }
  0x5b   : > { %785 = vmatmul.mubr.msk.f32.gmra.mxu0 %vm203_vm0, %v169_v27  ;;  %797 = vmatmul.mubr.msk.f32.gmra.mxu1 %vm203_vm0, %v177_v28  ;;  %v491_v27 = vadd.s32 %v1073_v36, %v474_v11  ;;  %v477_v11 = vadd.s32 112, %v1069_v34 }
  0x5c   : > { %787 = vmatprep.mubr.msk.f32.mxu0 %vm203_vm0, %v170_v29  ;;  %799 = vmatprep.mubr.msk.f32.mxu1 %vm203_vm0, %v178_v30 }
  0x5d   : > { %vm507_vm11 = vcmp.lt.s32.totalorder %v491_v27, 256 }
  0x5f   : > { %788 = vmatmul.mubr.msk.f32.gmra.mxu0 %vm203_vm0, %v171_v31  ;;  %800 = vmatmul.mubr.msk.f32.gmra.mxu1 %vm203_vm0, %v179_v32  ;;  %v490_v31 = vadd.s32 %v1073_v36, %v473_v14 }
  0x61   : > { %vm506_vm12 = vcmp.lt.s32.totalorder %v490_v31, 256 }
 0x113   : > { %v780_v41 = vpop.f32.mrf.mxu0  ;;  %v1087_v45 = vpop.f32.mrf.mxu1 }
 0x114   : > { %v372_v46 = vadd.f32 %v780_v41, %v1079_v38  ;;  %v412_v39 = vadd.f32 %v1087_v45, %v1079_v38 }
 0x115   : > { %v366_v49 = vpop.f32.mrf.mxu0  ;;  %v406_v53 = vpop.f32.mrf.mxu1 }
 0x116   : > { %v446_v55 = vmax.f32 %v372_v46, 0.0  ;;  %v367_v56 = vadd.f32 %v1079_v38, %v366_v49  ;;  %v407_v30 = vadd.f32 %v1079_v38, %v406_v53  ;;  %v475_v53 = vadd.s32 96, %v1069_v34 }
 0x117   : > { %v783_v57 = vpop.f32.mrf.mxu0  ;;  %v1099_v60 = vpop.f32.mrf.mxu1  ;;  %v454_v59 = vmax.f32 %v412_v39, 0.0 }
 0x118   : > { %v445_v61 = vmax.f32 %v367_v56, 0.0  ;;  %v382_v62 = vadd.f32 %v783_v57, %v1079_v38  ;;  %v545_v4 = vsel %vm497_vm1, %v446_v55, 0.0  ;;  %v453_v50 = vmax.f32 %v407_v30, 0.0 }
 0x119   : > { %v376_v0 = vpop.f32.mrf.mxu0  ;;  %v416_v3 = vpop.f32.mrf.mxu1  ;;  %v582_v15 = vmul.f32 %v545_v4, %v545_v4  ;;  %vm619_vm1 = vcmask 1040384  }
 0x11a   : > { %v544_v5 = vsel %vm496_vm2, %v445_v61, 0.0  ;;  %v448_v6 = vmax.f32 %v382_v62, 0.0  ;;  %v377_v7 = vadd.f32 %v1079_v38, %v376_v0  ;;  %v417_v52 = vadd.f32 %v1079_v38, %v416_v3 }
 0x11b   : > { %v581_v8 = vmul.f32 %v544_v5, %v544_v5  ;;  %v786_v9 = vpop.f32.mrf.mxu0  ;;  %v560_v16 = vadd.f32 %v545_v4, %v544_v5  ;;  %v798_v18 = vpop.f32.mrf.mxu1  ;;  %v422_v61 = vadd.f32 %v1099_v60, %v1079_v38  ;;  %v552_v4 = vsel %vm504_vm9, %v453_v50, 0.0 }
 0x11c   : > { %v447_v12 = vmax.f32 %v377_v7, 0.0  ;;  %v392_v13 = vadd.f32 %v786_v9, %v1079_v38  ;;  %v547_v19 = vsel %vm499_vm3, %v448_v6, 0.0  ;;  %v455_v5 = vmax.f32 %v417_v52, 0.0 }
 0x11d   : > { %v386_v17 = vpop.f32.mrf.mxu0  ;;  %v597_v23 = vadd.f32 %v582_v15, %v581_v8  ;;  %v584_v32 = vmul.f32 %v547_v19, %v547_v19  ;;  %v426_v40 = vpop.f32.mrf.mxu1  ;;  %v492_v7 = vadd.s32 %v1073_v36, %v475_v53  ;;  %v553_v60 = vsel %vm505_vm10, %v454_v59, 0.0 }
 0x11e   : > { %v546_v20 = vsel %vm498_vm4, %v447_v12, 0.0  ;;  %v450_v21 = vmax.f32 %v392_v13, 0.0  ;;  %v387_v22 = vadd.f32 %v1079_v38, %v386_v17  ;;  %v427_v6 = vadd.f32 %v1079_v38, %v426_v40 }
 0x11f   : > { %v561_v24 = vadd.f32 %v560_v16, %v546_v20  ;;  %v583_v25 = vmul.f32 %v546_v20, %v546_v20  ;;  %v789_v26 = vpop.f32.mrf.mxu0  ;;  %v801_v56 = vpop.f32.mrf.mxu1  ;;  %v456_v12 = vmax.f32 %v422_v61, 0.0  ;;  %v432_v13 = vadd.f32 %v798_v18, %v1079_v38 }
 0x120   : > { %v449_v28 = vmax.f32 %v387_v22, 0.0  ;;  %v402_v29 = vadd.f32 %v789_v26, %v1079_v38  ;;  %v549_v41 = vsel %vm501_vm5, %v450_v21, 0.0  ;;  %v589_v15 = vmul.f32 %v552_v4, %v552_v4 }
 0x121   : > { %v598_v33 = vadd.f32 %v597_v23, %v583_v25  ;;  %v562_v35 = vadd.f32 %v561_v24, %v547_v19  ;;  %v396_v37 = vpop.f32.mrf.mxu0  ;;  %v586_v54 = vmul.f32 %v549_v41, %v549_v41  ;;  %v436_v9 = vpop.f32.mrf.mxu1  ;;  %v478_v17 = vadd.s32 120, %v1069_v34 }
 0x122   : > { %v548_v42 = vsel %vm500_vm6, %v449_v28, 0.0  ;;  %v452_v43 = vmax.f32 %v402_v29, 0.0  ;;  %v397_v44 = vadd.f32 %v1079_v38, %v396_v37  ;;  %v554_v19 = vsel %vm506_vm12, %v455_v5, 0.0  ;;  %v618_v5 = vld [vmem:[#allocation2] sm:$0x3] }
 0x123   : > { %v563_v46 = vadd.f32 %v562_v35, %v548_v42  ;;  %v585_v47 = vmul.f32 %v548_v42, %v548_v42  ;;  %v599_v48 = vadd.f32 %v598_v33, %v584_v32  ;;  %v457_v20 = vmax.f32 %v427_v6, 0.0 }
 0x124   : > { %v451_v49 = vmax.f32 %v397_v44, 0.0  ;;  %v551_v57 = vsel %vm503_vm7, %v452_v43, 0.0  ;;  %vm508_vm13 = vcmp.lt.s32.totalorder %v492_v7, 256  ;;  %v437_v21 = vadd.f32 %v1079_v38, %v436_v9 }
 0x125   : > { %v600_v45 = vadd.f32 %v599_v48, %v585_v47  ;;  %v564_v55 = vadd.f32 %v563_v46, %v549_v41  ;;  %v588_v63 = vmul.f32 %v551_v57, %v551_v57  ;;  %v590_v22 = vmul.f32 %v553_v60, %v553_v60 }
 0x126   : > { %v550_v58 = vsel %vm502_vm8, %v451_v49, 0.0  ;;  %v494_v24 = vadd.s32 %v1073_v36, %v477_v11  ;;  %v555_v18 = vsel %vm507_vm11, %v456_v12, 0.0  ;;  %v458_v25 = vmax.f32 %v432_v13, 0.0 }
 0x127   : > { %v565_v62 = vadd.f32 %v564_v55, %v550_v58  ;;  %v587_v0 = vmul.f32 %v550_v58, %v550_v58  ;;  %v601_v3 = vadd.f32 %v600_v45, %v586_v54  ;;  %v442_v26 = vadd.f32 %v801_v56, %v1079_v38 }
 0x128   : > { %v591_v29 = vmul.f32 %v554_v19, %v554_v19  ;;  %v495_v30 = vadd.s32 %v1073_v36, %v478_v17  ;;  %v556_v31 = vsel %vm508_vm13, %v457_v20, 0.0  ;;  %v459_v32 = vmax.f32 %v437_v21, 0.0 }
 0x129   : > { %v602_v8 = vadd.f32 %v601_v3, %v587_v0  ;;  %v566_v1 = vadd.f32 %v565_v62, %v551_v57  ;;  %v592_v33 = vmul.f32 %v555_v18, %v555_v18  ;;  %vm510_vm15 = vcmp.lt.s32.totalorder %v494_v24, 256 }
 0x12a   : > { %v557_v39 = vsel %vm509_vm14, %v458_v25, 0.0  ;;  %v460_v40 = vmax.f32 %v442_v26, 0.0  ;;  %v593_v27 = vmul.f32 %v556_v31, %v556_v31  ;;  %vm511_vm0 = vcmp.lt.s32.totalorder %v495_v30, 256 }
 0x12b   : > { %v567_v14 = vadd.f32 %v566_v1, %v552_v4  ;;  %v603_v16 = vadd.f32 %v602_v8, %v588_v63  ;;  %v558_v43 = vsel %vm510_vm15, %v459_v32, 0.0  ;;  %v594_v44 = vmul.f32 %v557_v39, %v557_v39 }
 0x12c   : > { %v559_v47 = vsel %vm511_vm0, %v460_v40, 0.0  ;;  %v595_v49 = vmul.f32 %v558_v43, %v558_v43 }
 0x12d   : > { %v604_v23 = vadd.f32 %v603_v16, %v589_v15  ;;  %v568_v10 = vadd.f32 %v567_v14, %v553_v60  ;;  %v596_v50 = vmul.f32 %v559_v47, %v559_v47 }
 0x12f   : > { %v569_v28 = vadd.f32 %v568_v10, %v554_v19  ;;  %v605_v34 = vadd.f32 %v604_v23, %v590_v22 }
 0x131   : > { %v606_v35 = vadd.f32 %v605_v34, %v591_v29  ;;  %v570_v37 = vadd.f32 %v569_v28, %v555_v18 }
 0x133   : > { %v571_v41 = vadd.f32 %v570_v37, %v556_v31  ;;  %v607_v42 = vadd.f32 %v606_v35, %v592_v33 }
 0x135   : > { %v608_v38 = vadd.f32 %v607_v42, %v593_v27  ;;  %v572_v46 = vadd.f32 %v571_v41, %v557_v39 }
 0x137   : > { %v573_v48 = vadd.f32 %v572_v46, %v558_v43  ;;  %v609_v36 = vadd.f32 %v608_v38, %v594_v44 }
 0x139   : > { %v574_v52 = vadd.f32 %v573_v48, %v559_v47  ;;  %v610_v53 = vadd.f32 %v609_v36, %v595_v49 }
 0x13b   : > { %v575_v54 = vrot.slane %v574_v52, 4  ;;  %v611_v45 = vadd.f32 %v610_v53, %v596_v50 }
 0x13d   : > { %v576_v55 = vadd.f32 %v575_v54, %v574_v52  ;;  %v612_v51 = vrot.slane %v611_v45, 4 }
 0x13f   : > { %v577_v56 = vrot.slane %v576_v55, 2  ;;  %v613_v57 = vadd.f32 %v612_v51, %v611_v45 }
 0x141   : > { %v578_v58 = vadd.f32 %v577_v56, %v576_v55  ;;  %v614_v59 = vrot.slane %v613_v57, 2 }
 0x143   : > { %v579_v61 = vrot.slane %v578_v58, 1  ;;  %v615_v62 = vadd.f32 %v614_v59, %v613_v57 }
 0x145   : > { %v616_v0 = vrot.slane %v615_v62, 1  ;;  %v580_v3 = vadd.f32 %v579_v61, %v578_v58 }
 0x147   : > { %v617_v4 = vadd.f32 %v616_v0, %v615_v62 }
 0x149   : > { %v620_v6 = vsel %vm619_vm1, %v580_v3, %v617_v4 }
 0x14a   : > { %v621_v7 = vadd.f32 %v620_v6, %v618_v5 }
 0x14c   : > { %622 = vst [vmem:[#allocation2] sm:$0x3] %v621_v7 }
 0x14d   : > { %863 = shalt.err (!%p860_p12)
}
 0x14e   : > { %835 = dma.vmem_to_hbm [thread:$0]  (%p838_p5), %s631_s30, 32, %s1175_s3, [#allocation3]  }
 0x14f   : > { %879 = dma.done.wait (%p838_p5), [#allocation3], 32  }
 0x150   : > { %881 = vsyncadd (%p838_p5), [#allocation3], 4294967264 }
 0x151 PF: > { %s14_s12 = sadd.s32 1, %s884_s12  }
 0x152   : > { %p11_p13 = scmp.ge.s32.totalorder %s14_s12, 4  }
 0x154   :  { %13 = sbr.rel (!%p11_p13) target bundleno = 1 (0x1), region = 63 }
 0x159   :  { %643 = vsyncpa [#allocation3], 1 }
 0x15a   :  { %645 = vsyncpa [#allocation3 + $0x1], 1 }

</bundles_post_ra>
